<compile_context>
chip_gen: v6e
topology: v6e:2x2x1
jax: 0.10.0
libtpu: 0.0.40
codegen_flags: <defaults>
</compile_context>

<pallas_src>
import functools

import jax
import jax.numpy as jnp
import numpy as np
from jax import lax
from jax.experimental import pallas as pl
from jax.experimental.pallas import tpu as pltpu


def _round_up(x, m):
    return ((x + m - 1) // m) * m


def _pick_tile(dim, base, cap):
    """Largest tile <= cap that divides `dim` and is a multiple of `base`;
    falls back to the full dim (always legal).  Callers pad the lane (N) and
    reduction (K) dims to multiples of 128, so the full-dim fallback only
    triggers for small / already-resident arrays."""
    if dim <= cap:
        return dim
    if dim % base != 0:
        return dim
    t = (cap // base) * base
    while dim % t != 0:
        t -= base
    return max(t, base)


# ----------------------------------------------------------------------------
# Generic tiled matmul + bias kernel:  out = x @ w + b   (f32 accumulation)
# Grid = (M/tm, N/tn, K/tk); M,N are "parallel" (megacore-shardable), K is the
# trailing "arbitrary" reduction axis with an accumulator scratch.
# ----------------------------------------------------------------------------

def _matmul_bias_kernel(x_ref, w_ref, b_ref, o_ref, acc_ref):
    @pl.when(pl.program_id(2) == 0)
    def _():
        acc_ref[...] = jnp.zeros_like(acc_ref)

    acc_ref[...] += jnp.dot(x_ref[...], w_ref[...],
                            preferred_element_type=jnp.float32)

    @pl.when(pl.program_id(2) == pl.num_programs(2) - 1)
    def _():
        o_ref[...] = (acc_ref[...] + b_ref[...]).astype(o_ref.dtype)


def matmul_bias(x, w, b, *, tm_cap=256, tn_cap=512, tk_cap=512):
    """x: (M, K), w: (K, N), b: (1, N) -> (M, N) f32.
    N (and ideally K) should be multiples of 128 (the wrapper pads H/V), so
    output stores stay lane-dense and weight tiles stay bounded."""
    M, K = x.shape
    N = w.shape[1]
    tm = _pick_tile(M, 8, tm_cap)      # sublane-aligned row tiles
    tn = _pick_tile(N, 128, tn_cap)    # lane-dense, bounded even for big V
    tk = _pick_tile(K, 128, tk_cap)    # K-tiled so weight blocks don't grow with H
    # NOTE: at production sizes choose caps so the M/N grid is >= (2,2) to keep
    # both v7x TensorCores busy; at the toy test sizes the grid collapses to 1.
    return pl.pallas_call(
        _matmul_bias_kernel,
        out_shape=jax.ShapeDtypeStruct((M, N), jnp.float32),
        grid_spec=pltpu.PrefetchScalarGridSpec(
            num_scalar_prefetch=0,
            grid=(M // tm, N // tn, K // tk),
            in_specs=[
                pl.BlockSpec((tm, tk), lambda i, j, k: (i, k)),
                pl.BlockSpec((tk, tn), lambda i, j, k: (k, j)),
                pl.BlockSpec((1, tn), lambda i, j, k: (0, j)),
            ],
            out_specs=pl.BlockSpec((tm, tn), lambda i, j, k: (i, j)),
            scratch_shapes=[pltpu.VMEM((tm, tn), jnp.float32)],
        ),
        compiler_params=pltpu.CompilerParams(
            dimension_semantics=("parallel", "parallel", "arbitrary"),
            vmem_limit_bytes=64 * 1024 * 1024),
    )(x, w, b)


# ----------------------------------------------------------------------------
# Serial GRU recurrence: one pallas_call, grid over T-chunks ("arbitrary").
# gates stream + hidden outputs are blocked over T (double-buffered DMA behind
# the serial matmul chain); whh / ctx / bhn / h0 are resident; the hidden
# state is carried across chunks in the resident `hfin` output block.
# ----------------------------------------------------------------------------

def _gru_recurrence_kernel(gx_ref, ctx_ref, h0_ref, whh_ref, bhn_ref,
                           hall_ref, hfin_ref, *, unroll):
    """gx_ref  : (Tt, Bp, 3Hp)  x_t @ Wih_x  (no bias), streamed chunk
       ctx_ref : (Bp, 3Hp)      h_enc @ Wih_c + bih + [bhh_r, bhh_z, 0]
       h0_ref  : (Bp, Hp)       initial hidden state
       whh_ref : (Hp, 3Hp)      fused hidden->hidden weights (r, z, n)
       bhn_ref : (1, Hp)        candidate-gate hidden bias (scaled by r)
       hall_ref: (Tt, Bp, Hp)   hidden states of this chunk
       hfin_ref: (Bp, Hp)       resident carry / final hidden state
    """
    Tt = gx_ref.shape[0]
    Bp = h0_ref.shape[0]
    Hp = hall_ref.shape[-1]

    @pl.when(pl.program_id(0) == 0)
    def _():
        hfin_ref[...] = h0_ref[...]

    # Hoisted loads / broadcasts: JAX does not CSE broadcast_in_dim, so these
    # must not be re-emitted inside the (partially) unrolled loop.
    whh = whh_ref[...]                                    # (Hp, 3Hp), mm dtype
    ctx = ctx_ref[...]                                    # (Bp, 3Hp), f32
    bhn = jnp.broadcast_to(bhn_ref[...], (Bp, Hp))        # (Bp, Hp), f32
    mm_dtype = whh.dtype

    def body(t, h):
        gx = gx_ref[t] + ctx                                         # (Bp, 3Hp)
        # TODO(synk): for small-batch decode, stage whh in the MXU once via
        # pltpu.matmul_push_rhs / matmul_acc_lhs instead of re-streaming it
        # every step; with Bp=8 the systolic array is heavily under-filled.
        gh = jnp.dot(h.astype(mm_dtype), whh,
                     preferred_element_type=jnp.float32)             # (Bp, 3Hp)
        r = jax.nn.sigmoid(gx[:, :Hp] + gh[:, :Hp])
        z = jax.nn.sigmoid(gx[:, Hp:2 * Hp] + gh[:, Hp:2 * Hp])
        n = jnp.tanh(gx[:, 2 * Hp:] + r * (gh[:, 2 * Hp:] + bhn))
        h_new = (1.0 - z) * n + z * h
        hall_ref[t] = h_new
        return h_new

    hfin_ref[...] = lax.fori_loop(0, Tt, body, hfin_ref[...], unroll=unroll)


def run_gru_recurrence(gates_x, ctx_gates, h0, whh, bhn, *,
                       t_chunk=None, vmem_budget_bytes=8 * 1024 * 1024):
    T, Bp, threeHp = gates_x.shape
    Hp = h0.shape[-1]
    if t_chunk is None:
        # Chunk T so the double-buffered gate stream + hidden outputs stay
        # within a fixed VMEM budget regardless of sequence length / H.
        per_step_bytes = Bp * (threeHp + Hp) * 4
        t_chunk = max(1, min(T, vmem_budget_bytes // (2 * per_step_bytes)))
    tt = _pick_tile(T, 1, t_chunk)
    unroll = min(4, tt)   # partial unroll: LLO visibility without vreg spills

    kernel = functools.partial(_gru_recurrence_kernel, unroll=unroll)
    return pl.pallas_call(
        kernel,
        out_shape=(jax.ShapeDtypeStruct((T, Bp, Hp), jnp.float32),
                   jax.ShapeDtypeStruct((Bp, Hp), jnp.float32)),
        grid_spec=pltpu.PrefetchScalarGridSpec(
            num_scalar_prefetch=0,
            grid=(T // tt,),
            in_specs=[
                pl.BlockSpec((tt, Bp, threeHp), lambda t: (t, 0, 0)),  # stream
                pl.BlockSpec((Bp, threeHp), lambda t: (0, 0)),         # resident
                pl.BlockSpec((Bp, Hp), lambda t: (0, 0)),              # resident
                pl.BlockSpec((Hp, threeHp), lambda t: (0, 0)),         # resident
                pl.BlockSpec((1, Hp), lambda t: (0, 0)),               # resident
            ],
            out_specs=(pl.BlockSpec((tt, Bp, Hp), lambda t: (t, 0, 0)),
                       pl.BlockSpec((Bp, Hp), lambda t: (0, 0))),
        ),
        compiler_params=pltpu.CompilerParams(
            dimension_semantics=("arbitrary",),
            vmem_limit_bytes=64 * 1024 * 1024),
    )(gates_x, ctx_gates, h0, whh, bhn)


# ----------------------------------------------------------------------------
# Parameters + one-time layout preparation (padding / fusing / casting)
# ----------------------------------------------------------------------------

def make_params(key, vocab_size, embed_size, num_hiddens):
    ks = jax.random.split(key, 7)
    s = 0.1
    E, H, V = embed_size, num_hiddens, vocab_size
    return {
        "embedding": s * jax.random.normal(ks[0], (V, E), jnp.float32),
        # fused gate layouts, gate order (r, z, n) along the output dim
        "wih": s * jax.random.normal(ks[1], (E + H, 3 * H), jnp.float32),
        "whh": s * jax.random.normal(ks[2], (H, 3 * H), jnp.float32),
        "bih": s * jax.random.normal(ks[3], (1, 3 * H), jnp.float32),
        "bhh": s * jax.random.normal(ks[4], (1, 3 * H), jnp.float32),
        "wd":  s * jax.random.normal(ks[5], (H, V), jnp.float32),
        "bd":  s * jax.random.normal(ks[6], (1, V), jnp.float32),
    }


def _pad_axis(a, axis, new_size):
    pad = new_size - a.shape[axis]
    if pad == 0:
        return a
    widths = [(0, 0)] * a.ndim
    widths[axis] = (0, pad)
    return jnp.pad(a, widths)


def _pad_gates(w, H, Hp):
    """(in, 3H) fused (r,z,n) -> (in, 3Hp): each gate zero-padded to Hp so
    gate slices inside the kernel are lane-aligned (Hp multiple of 128)."""
    parts = [_pad_axis(w[..., g * H:(g + 1) * H], -1, Hp) for g in range(3)]
    return jnp.concatenate(parts, axis=-1)


def prepare_params(params, *, mm_dtype=jnp.bfloat16):
    """One-time (per checkpoint) layout prep: split wih into x/context halves,
    fold r/z hidden biases into the context-side bias, pad H->Hp and V->Vp to
    multiples of 128, and cast matmul operands to the MXU dtype."""
    E = params["embedding"].shape[1]
    H = params["whh"].shape[0]
    V = params["wd"].shape[1]
    Hp = _round_up(H, 128)
    Vp = _round_up(V, 128)
    wih = params["wih"]
    # bhh_r / bhh_z fold into the (once-computed) context gates; bhh_n must
    # stay separate because it is scaled by r inside the recurrence.
    bias_x = params["bih"] + jnp.concatenate(
        [params["bhh"][:, :2 * H], jnp.zeros((1, H), jnp.float32)], axis=-1)
    return {
        "embedding": params["embedding"].astype(mm_dtype),             # (V, E)
        "wih_x": _pad_gates(wih[:E], H, Hp).astype(mm_dtype),          # (E, 3Hp)
        "wih_c": _pad_axis(_pad_gates(wih[E:], H, Hp), 0, Hp).astype(mm_dtype),
        "whh":   _pad_axis(_pad_gates(params["whh"], H, Hp), 0, Hp).astype(mm_dtype),
        "bias_x": _pad_gates(bias_x, H, Hp),                           # f32 (1, 3Hp)
        "bhn":   _pad_axis(params["bhh"][:, 2 * H:], -1, Hp),          # f32 (1, Hp)
        "wd":    _pad_axis(_pad_axis(params["wd"], 0, Hp), 1, Vp).astype(mm_dtype),
        "bd":    _pad_axis(params["bd"], -1, Vp),                      # f32 (1, Vp)
        "E": E, "H": H, "Hp": Hp, "V": V, "Vp": Vp,
        "mm_dtype": mm_dtype,
    }


def decoder_init_state(enc_final_hidden):
    # state = encoder's final hidden state, shape (num_layers=1, B, H)
    return enc_final_hidden


# ----------------------------------------------------------------------------
# Decoder forward
# ----------------------------------------------------------------------------

def decoder_forward(X_tokens, state, prep, *, t_chunk=None):
    """X_tokens: (B, T) int32 token ids; state: (1, B, H) from the encoder."""
    B, T = X_tokens.shape
    E, H, Hp = prep["E"], prep["H"], prep["Hp"]
    V, Vp = prep["V"], prep["Vp"]
    mm_dtype = prep["mm_dtype"]

    # Pad batch at the token level (cheap int32 pad) so nothing downstream is
    # re-padded; padded rows are independent and sliced off at the end.
    Bp = _round_up(max(B, 8), 8)
    X_p = _pad_axis(X_tokens, 0, Bp)                         # (Bp, T)
    h0_p = _pad_axis(_pad_axis(state[-1], 0, Bp), -1, Hp)    # (Bp, Hp), zero-padded

    # Embedding gather + reorder stay in the wrapper (layout plumbing).
    # TODO(synk): embedding gather is left to XLA (jnp.take); a DMA-gather
    # Pallas kernel is not worthwhile at these sizes.
    emb = jnp.take(prep["embedding"], X_p, axis=0)           # (Bp, T, E)
    xs = jnp.transpose(emb, (1, 0, 2))                       # (T, Bp, E)

    # (1) Context gate projection + all folded biases, computed ONCE (not per T).
    ctx_gates = matmul_bias(h0_p.astype(mm_dtype), prep["wih_c"], prep["bias_x"])

    # (2) Input-path gate projection for ALL time steps — one parallel matmul
    #     (K = E only; the H-wide half lives in ctx_gates now).
    gates_x = matmul_bias(xs.reshape(T * Bp, E), prep["wih_x"],
                          jnp.zeros((1, 3 * Hp), jnp.float32))
    gates_x = gates_x.reshape(T, Bp, 3 * Hp)

    # (3) Serial recurrence, streamed over T-chunks.
    h_all_p, h_fin_p = run_gru_recurrence(gates_x, ctx_gates, h0_p,
                                          prep["whh"], prep["bhn"],
                                          t_chunk=t_chunk)

    # (4) Vocab projection producing logits directly in (B, T, V): reorder the
    #     SMALL hidden tensor (not the big logits tensor) before the matmul.
    h_bt = jnp.transpose(h_all_p[:, :B, :], (1, 0, 2))       # (B, T, Hp)
    logits = matmul_bias(h_bt.reshape(B * T, Hp).astype(mm_dtype),
                         prep["wd"], prep["bd"])              # (B*T, Vp)
    output = logits.reshape(B, T, Vp)[:, :, :V]               # (B, T, V)
    new_state = h_fin_p[:B, :H][None]                         # (1, B, H)
    return output, new_state


# ----------------------------------------------------------------------------
# pure-JAX reference (PyTorch nn.GRU equations, gate order r, z, n)
# ----------------------------------------------------------------------------

def reference_forward(X_tokens, state, params):
    B, T = X_tokens.shape
    H = state.shape[-1]
    emb = jnp.take(params["embedding"], X_tokens, axis=0)
    xs = jnp.transpose(emb, (1, 0, 2))
    context = jnp.broadcast_to(state[-1], (T, B, H))
    x_and_ctx = jnp.concatenate([xs, context], axis=-1)

    def step(h, x):
        gx = x @ params["wih"] + params["bih"]
        gh = h @ params["whh"] + params["bhh"]
        r = jax.nn.sigmoid(gx[:, :H] + gh[:, :H])
        z = jax.nn.sigmoid(gx[:, H:2 * H] + gh[:, H:2 * H])
        n = jnp.tanh(gx[:, 2 * H:] + r * gh[:, 2 * H:])
        h_new = (1.0 - z) * n + z * h
        return h_new, h_new

    h_final, hs = lax.scan(step, state[-1], x_and_ctx)        # hs: (T, B, H)
    outs = hs @ params["wd"] + params["bd"]                   # (T, B, V)
    return jnp.transpose(outs, (1, 0, 2)), h_final[None]


# ----------------------------------------------------------------------------
# main
# ----------------------------------------------------------------------------

if __name__ == "__main__":
    B, T = 2, 8            # batch, num_steps
    E, H, V = 16, 32, 64   # embed_size, num_hiddens, vocab_size

    key = jax.random.PRNGKey(0)
    k_tok, k_h0, k_par = jax.random.split(key, 3)

    params = make_params(k_par, V, E, H)
    X_tokens = jax.random.randint(k_tok, (B, T), 0, V, dtype=jnp.int32)
    enc_hidden = 0.1 * jax.random.normal(k_h0, (1, B, H), jnp.float32)
    state = decoder_init_state(enc_hidden)

    ref_out, ref_state = reference_forward(X_tokens, state, params)

    # f32 MXU path: tight check; t_chunk=2 forces the multi-chunk streamed
    # recurrence (grid=(4,)) so the carry-across-chunks path is exercised.
    prep_f32 = prepare_params(params, mm_dtype=jnp.float32)
    out, new_state = decoder_forward(X_tokens, state, prep_f32, t_chunk=2)
    out = jax.block_until_ready(out)
    new_state = jax.block_until_ready(new_state)
    np.testing.assert_allclose(np.asarray(out), np.asarray(ref_out),
                               rtol=1e-5, atol=1e-5)
    np.testing.assert_allclose(np.asarray(new_state), np.asarray(ref_state),
                               rtol=1e-5, atol=1e-5)

    # bf16 MXU path (production default on v6e/v7x/v5e): looser tolerance.
    prep_bf16 = prepare_params(params, mm_dtype=jnp.bfloat16)
    out16, state16 = decoder_forward(X_tokens, state, prep_bf16)
    out16 = jax.block_until_ready(out16)
    state16 = jax.block_until_ready(state16)
    np.testing.assert_allclose(np.asarray(out16), np.asarray(ref_out),
                               rtol=5e-2, atol=5e-2)
    np.testing.assert_allclose(np.asarray(state16), np.asarray(ref_state),
                               rtol=5e-2, atol=5e-2)

    assert out.shape == (B, T, V) and new_state.shape == (1, B, H)
    print("KERNEL_OK")
</pallas_src>

<mosaic_0001>
module attributes {stable_mosaic.version = 11 : i64} {
  func.func @_matmul_bias_kernel(%arg0: i32, %arg1: i32, %arg2: i32, %arg3: memref<8x128xf32, #tpu.memory_space<vmem>>, %arg4: memref<128x384xf32, #tpu.memory_space<vmem>>, %arg5: memref<1x384xf32, #tpu.memory_space<vmem>>, %arg6: memref<8x384xf32, #tpu.memory_space<vmem>>, %arg7: memref<8x384xf32, #tpu.memory_space<vmem>>) attributes {dimension_semantics = [#tpu.dimension_semantics<parallel>, #tpu.dimension_semantics<parallel>, #tpu.dimension_semantics<arbitrary>], iteration_bounds = array<i64: 1, 1, 1>, scalar_prefetch = 0 : i64, scratch_operands = 1 : i64, tpu.core_type = #tpu.core_type<tc>, window_params = [{transform_indices = @transform_0, window_bounds = array<i64: 8, 128>}, {transform_indices = @transform_1, window_bounds = array<i64: 128, 384>}, {transform_indices = @transform_2, window_bounds = array<i64: 1, 384>}, {transform_indices = @transform_3, window_bounds = array<i64: 8, 384>}]} {
    %c0_i32 = arith.constant 0 : i32
    %0 = arith.cmpi eq, %arg2, %c0_i32 : i32
    %1 = arith.extui %0 : i1 to i32
    %c0_i32_0 = arith.constant 0 : i32
    %2 = arith.cmpi ne, %1, %c0_i32_0 : i32
    scf.if %2 {
      %cst_10 = arith.constant 0.000000e+00 : f32
      %12 = vector.broadcast %cst_10 : f32 to vector<8x384xf32>
      %c0_11 = arith.constant 0 : index
      %c0_12 = arith.constant 0 : index
      %13 = vector.load %arg7[%c0_11, %c0_12] : memref<8x384xf32, #tpu.memory_space<vmem>>, vector<8x384xf32>
      tpu.vector_store %arg7[%c0_11, %c0_12], %12 {strides = array<i32>} : memref<8x384xf32, #tpu.memory_space<vmem>>, vector<8x384xf32>,
    } else {
    }
    %c0 = arith.constant 0 : index
    %c0_1 = arith.constant 0 : index
    %3 = vector.load %arg7[%c0, %c0_1] : memref<8x384xf32, #tpu.memory_space<vmem>>, vector<8x384xf32>
    %c0_2 = arith.constant 0 : index
    %c0_3 = arith.constant 0 : index
    %4 = vector.load %arg3[%c0_2, %c0_3] : memref<8x128xf32, #tpu.memory_space<vmem>>, vector<8x128xf32>
    %c0_4 = arith.constant 0 : index
    %c0_5 = arith.constant 0 : index
    %5 = vector.load %arg4[%c0_4, %c0_5] : memref<128x384xf32, #tpu.memory_space<vmem>>, vector<128x384xf32>
    %cst = arith.constant dense<0.000000e+00> : vector<8x384xf32>
    %6 = tpu.matmul %4, %5, %cst {dimension_numbers = #tpu.dot_dimension_numbers<[1], [0], [0], [1], [0, 0, 1, 1], [], []>} : vector<8x128xf32>, vector<128x384xf32>, vector<8x384xf32> -> vector<8x384xf32>
    %7 = arith.addf %3, %6 : vector<8x384xf32>
    %c0_6 = arith.constant 0 : index
    %c0_7 = arith.constant 0 : index
    %8 = vector.load %arg7[%c0_6, %c0_7] : memref<8x384xf32, #tpu.memory_space<vmem>>, vector<8x384xf32>
    tpu.vector_store %arg7[%c0_6, %c0_7], %7 {strides = array<i32>} : memref<8x384xf32, #tpu.memory_space<vmem>>, vector<8x384xf32>,
    %c0_i32_8 = arith.constant 0 : i32
    %9 = arith.cmpi eq, %arg2, %c0_i32_8 : i32
    %10 = arith.extui %9 : i1 to i32
    %c0_i32_9 = arith.constant 0 : i32
    %11 = arith.cmpi ne, %10, %c0_i32_9 : i32
    scf.if %11 {
      %c0_10 = arith.constant 0 : index
      %c0_11 = arith.constant 0 : index
      %12 = vector.load %arg7[%c0_10, %c0_11] : memref<8x384xf32, #tpu.memory_space<vmem>>, vector<8x384xf32>
      %c0_12 = arith.constant 0 : index
      %c0_13 = arith.constant 0 : index
      %13 = vector.load %arg5[%c0_12, %c0_13] : memref<1x384xf32, #tpu.memory_space<vmem>>, vector<1x384xf32>
      %14 = vector.broadcast %13 : vector<1x384xf32> to vector<8x384xf32>
      %15 = arith.addf %12, %14 : vector<8x384xf32>
      %c0_14 = arith.constant 0 : index
      %c0_15 = arith.constant 0 : index
      %16 = vector.load %arg6[%c0_14, %c0_15] : memref<8x384xf32, #tpu.memory_space<vmem>>, vector<8x384xf32>
      tpu.vector_store %arg6[%c0_14, %c0_15], %15 {strides = array<i32>} : memref<8x384xf32, #tpu.memory_space<vmem>>, vector<8x384xf32>,
    } else {
    }
    return
  }
  func.func @transform_0(%arg0: i32, %arg1: i32, %arg2: i32) -> (i32, i32) {
    %c0_i32 = arith.constant 0 : i32
    return %arg0, %arg2 : i32, i32
  }
  func.func @transform_1(%arg0: i32, %arg1: i32, %arg2: i32) -> (i32, i32) {
    %c0_i32 = arith.constant 0 : i32
    return %arg2, %arg1 : i32, i32
  }
  func.func @transform_2(%arg0: i32, %arg1: i32, %arg2: i32) -> (i32, i32) {
    %c0_i32 = arith.constant 0 : i32
    %c0_i32_0 = arith.constant 0 : i32
    return %c0_i32, %arg1 : i32, i32
  }
  func.func @transform_3(%arg0: i32, %arg1: i32, %arg2: i32) -> (i32, i32) {
    %c0_i32 = arith.constant 0 : i32
    return %arg0, %arg1 : i32, i32
  }
}

</mosaic_0001>

<bundles_post_ra>
// kernel: tpu_custom_call.1
= control target key start
LH: loop header
LB: loop body
LE: loop exit
PB: predicated region body
PF: predicated region fallthrough
CT: control target
= control target key end

     0   :  { %8 = vsyncpa [#allocation4], 0  ;;  %s474_s0 = inlined_call_operand.hbm [shape: f32[8,128], index: 0, kind: input, shape index: {}]   ;;  %s475_s1 = inlined_call_operand.hbm [shape: f32[128,384], index: 1, kind: input, shape index: {}]   ;;  %s476_s2 = inlined_call_operand.vmem [shape: f32[1,384], index: 2, kind: input, shape index: {}]   ;;  %s477_s3 = inlined_call_operand.hbm [shape: f32[8,384], index: 3, kind: output, shape index: {}]  }
   0x1   :  { %9 = vsyncpa [#allocation7], 0 }
   0x2   :  { %10 = vsyncpa [#allocation5], 0  ;;  %s417_s12 = smov [#allocation3]   ;;  %s418_s14 = smov [#allocation6]  }
   0x3   :  { %s17_s13 = sshll.u32 %s417_s12, 4  ;;  %s26_s15 = sshll.u32 %s418_s14, 4  ;;  %s18_s13 = int_to_ptr.vmem [resolvable:$true] %s17_s13  ;;  %s27_s15 = int_to_ptr.vmem [resolvable:$true] %s26_s15 }
   0x4   :  { %s359_s16 = scalar_lea.vmem %s18_s13, 128  ;;  %p364_p1 = scmp.lt.s32.totalorder %s18_s13, %s18_s13 }
   0x5   :  { %p360_p0 = scmp.ne.s32.totalorder %s18_s13, %s359_s16  ;;  %p365_p2 = scmp.lt.s32.totalorder %s359_s16, %s359_s16 }
   0x7   :  { %p366_p3 = por %p365_p2, %p364_p1 }
   0x9   :  { %p367_p4 = pnand %p366_p3, %p360_p0 }
   0xb   :  { %370 = shalt.err (!%p367_p4)
}
   0xc   :  { %20 = dma.hbm_to_vmem [thread:$0]  %s474_s0, 128, %s18_s13, [#allocation4]  }
   0xd   :  { %s379_s19 = scalar_lea.vmem %s27_s15, 6144  ;;  %p384_p6 = scmp.lt.s32.totalorder %s27_s15, %s27_s15 }
   0xe   :  { %p380_p5 = scmp.ne.s32.totalorder %s27_s15, %s379_s19  ;;  %p385_p7 = scmp.lt.s32.totalorder %s379_s19, %s379_s19 }
  0x10   :  { %p386_p8 = por %p385_p7, %p384_p6 }
  0x12   :  { %p387_p9 = pnand %p386_p8, %p380_p5 }
  0x14   :  { %390 = shalt.err (!%p387_p9)
}
  0x15   :  { %s419_s20 = smov 384   ;;  %s420_s21 = smov 24  }
  0x16   :  { %32 = dma.hbm_to_vmem [thread:$0]  %s475_s1, 6144, %s27_s15, [#allocation7], %s419_s20, %s419_s20, %s420_s21  }
  0x17   :  { %411 = dma.done.wait [#allocation4], 128  }
  0x18   :  { %412 = vsyncadd [#allocation4], 4294967168 }
  0x19   :  { %413 = dma.done.wait [#allocation7], 6144  }
  0x1a   :  { %414 = vsyncadd [#allocation7], 4294961152  ;;  %v421_v0 = vmov 0.0   ;;  %vm422_vm0 = vmmov 0   ;;  %v98_v1 = vld [vmem:[#allocation6 + $0x170] sm:$0xff]  ;;  %v97_v2 = vld [vmem:[#allocation6 + $0x168] sm:$0xff]  ;;  %v255_v50 = vlaneseq }
  0x1b   :  { %309 = vmatprep.subr.mxu1 %v421_v0  ;;  %164 = vmatprep.mubr.f32.mxu0 %v421_v0  ;;  %v99_v3 = vld [vmem:[#allocation6 + $0x178] sm:$0xff]  ;;  %v94_v5 = vld [vmem:[#allocation6 + $0x150] sm:$0xff]  ;;  %v96_v6 = vld [vmem:[#allocation6 + $0x160] sm:$0xff]  ;;  %s423_s24 = smov [#allocation8]  }
  0x1c   :  { %341 = vmatprep.mubr.msk.f32.mxu1 %vm422_vm0, %v421_v0  ;;  %100 = vmatprep.subr.mxu0 %v98_v1  ;;  %v95_v4 = vld [vmem:[#allocation6 + $0x158] sm:$0xff]  ;;  %v92_v7 = vld [vmem:[#allocation6 + $0x140] sm:$0xff]  ;;  %v93_v8 = vld [vmem:[#allocation6 + $0x148] sm:$0xff]  ;;  %v256_v51 = vshrl.u32 %v255_v50, 7  ;;  %s282_s25 = sshll.u32 %s423_s24, 4  ;;  %s283_s25 = int_to_ptr.vmem [resolvable:$true] %s282_s25 }
  0x1d   :  { %310 = vmatpush3.msra.mxu1 %v99_v3  ;;  %101 = vmatpush1.msra.mxu0 %v97_v2  ;;  %v91_v9 = vld [vmem:[#allocation6 + $0x138] sm:$0xff]  ;;  %v89_v10 = vld [vmem:[#allocation6 + $0x128] sm:$0xff]  ;;  %v90_v11 = vld [vmem:[#allocation6 + $0x130] sm:$0xff]  ;;  %s391_s26 = scalar_lea.vmem %s283_s25, 384  ;;  %p396_p11 = scmp.lt.s32.totalorder %s283_s25, %s283_s25 }
  0x1e   :  { %311 = vmatprep.subr.mxu1 %v421_v0  ;;  %102 = vmatprep.subr.mxu0 %v95_v4  ;;  %v88_v12 = vld [vmem:[#allocation6 + $0x120] sm:$0xff]  ;;  %v86_v13 = vld [vmem:[#allocation6 + $0x110] sm:$0xff]  ;;  %v87_v14 = vld [vmem:[#allocation6 + $0x118] sm:$0xff]  ;;  %v265_v52 = vsub.s32 2, %v256_v51  ;;  %v257_v53 = vsub.s32 0, %v256_v51  ;;  %v261_v55 = vsub.s32 1, %v256_v51  ;;  %p392_p10 = scmp.ne.s32.totalorder %s283_s25, %s391_s26  ;;  %p397_p12 = scmp.lt.s32.totalorder %s391_s26, %s391_s26 }
  0x1f   :  { %312 = vmatpush3.msra.mxu1 %v96_v6  ;;  %103 = vmatpush1.msra.mxu0 %v94_v5  ;;  %v85_v15 = vld [vmem:[#allocation6 + $0x108] sm:$0xff]  ;;  %v83_v16 = vld [vmem:[#allocation6 + $0xf8] sm:$0xff]  ;;  %v84_v17 = vld [vmem:[#allocation6 + $0x100] sm:$0xff] }
  0x20   :  { %313 = vmatprep.subr.mxu1 %v421_v0  ;;  %104 = vmatprep.subr.mxu0 %v92_v7  ;;  %v82_v18 = vld [vmem:[#allocation6 + $0xf0] sm:$0xff]  ;;  %v80_v19 = vld [vmem:[#allocation6 + $0xe0] sm:$0xff]  ;;  %v81_v20 = vld [vmem:[#allocation6 + $0xe8] sm:$0xff]  ;;  %p398_p13 = por %p397_p12, %p396_p11 }
  0x21   :  { %314 = vmatpush3.msra.mxu1 %v93_v8  ;;  %105 = vmatpush1.msra.mxu0 %v91_v9  ;;  %v79_v21 = vld [vmem:[#allocation6 + $0xd8] sm:$0xff]  ;;  %v77_v22 = vld [vmem:[#allocation6 + $0xc8] sm:$0xff]  ;;  %v78_v23 = vld [vmem:[#allocation6 + $0xd0] sm:$0xff] }
  0x22   :  { %315 = vmatprep.subr.mxu1 %v421_v0  ;;  %106 = vmatprep.subr.mxu0 %v89_v10  ;;  %v76_v24 = vld [vmem:[#allocation6 + $0xc0] sm:$0xff]  ;;  %v74_v25 = vld [vmem:[#allocation6 + $0xb0] sm:$0xff]  ;;  %v75_v26 = vld [vmem:[#allocation6 + $0xb8] sm:$0xff]  ;;  %p399_p0 = pnand %p398_p13, %p392_p10 }
  0x23   :  { %316 = vmatpush3.msra.mxu1 %v90_v11  ;;  %107 = vmatpush1.msra.mxu0 %v88_v12  ;;  %v73_v27 = vld [vmem:[#allocation6 + $0xa8] sm:$0xff]  ;;  %v71_v28 = vld [vmem:[#allocation6 + $0x98] sm:$0xff]  ;;  %v72_v29 = vld [vmem:[#allocation6 + $0xa0] sm:$0xff] }
  0x24   :  { %317 = vmatprep.subr.mxu1 %v421_v0  ;;  %108 = vmatprep.subr.mxu0 %v86_v13  ;;  %v70_v30 = vld [vmem:[#allocation6 + $0x90] sm:$0xff]  ;;  %v68_v31 = vld [vmem:[#allocation6 + $0x80] sm:$0xff]  ;;  %v69_v32 = vld [vmem:[#allocation6 + $0x88] sm:$0xff] }
  0x25   :  { %318 = vmatpush3.msra.mxu1 %v87_v14  ;;  %109 = vmatpush1.msra.mxu0 %v85_v15  ;;  %v67_v33 = vld [vmem:[#allocation6 + $0x78] sm:$0xff]  ;;  %v65_v34 = vld [vmem:[#allocation6 + $0x68] sm:$0xff]  ;;  %v66_v35 = vld [vmem:[#allocation6 + $0x70] sm:$0xff] }
  0x26   :  { %319 = vmatprep.subr.mxu1 %v421_v0  ;;  %110 = vmatprep.subr.mxu0 %v83_v16  ;;  %v64_v36 = vld [vmem:[#allocation6 + $0x60] sm:$0xff]  ;;  %v62_v37 = vld [vmem:[#allocation6 + $0x50] sm:$0xff]  ;;  %v63_v38 = vld [vmem:[#allocation6 + $0x58] sm:$0xff] }
  0x27   :  { %320 = vmatpush3.msra.mxu1 %v84_v17  ;;  %111 = vmatpush1.msra.mxu0 %v82_v18  ;;  %v61_v39 = vld [vmem:[#allocation6 + $0x48] sm:$0xff]  ;;  %v59_v40 = vld [vmem:[#allocation6 + $0x38] sm:$0xff]  ;;  %v60_v41 = vld [vmem:[#allocation6 + $0x40] sm:$0xff] }
  0x28   :  { %321 = vmatprep.subr.mxu1 %v421_v0  ;;  %112 = vmatprep.subr.mxu0 %v80_v19  ;;  %v58_v42 = vld [vmem:[#allocation6 + $0x30] sm:$0xff]  ;;  %v56_v43 = vld [vmem:[#allocation6 + $0x20] sm:$0xff]  ;;  %v57_v44 = vld [vmem:[#allocation6 + $0x28] sm:$0xff] }
  0x29   :  { %322 = vmatpush3.msra.mxu1 %v81_v20  ;;  %113 = vmatpush1.msra.mxu0 %v79_v21  ;;  %v55_v45 = vld [vmem:[#allocation6 + $0x18] sm:$0xff]  ;;  %v53_v46 = vld [vmem:[#allocation6 + $0x8] sm:$0xff]  ;;  %v54_v47 = vld [vmem:[#allocation6 + $0x10] sm:$0xff] }
  0x2a   :  { %323 = vmatprep.subr.mxu1 %v421_v0  ;;  %114 = vmatprep.subr.mxu0 %v77_v22  ;;  %v52_v48 = vld [vmem:[#allocation6] sm:$0xff]  ;;  %v51_v49 = vld [vmem:[#allocation3] sm:$0xff] }
  0x2b   :  { %324 = vmatpush3.msra.mxu1 %v78_v23  ;;  %115 = vmatpush1.msra.mxu0 %v76_v24  ;;  %v253_v54 = vld [vmem:[%s476_s2] sm:$0x7] }
  0x2c   :  { %325 = vmatprep.subr.mxu1 %v421_v0  ;;  %116 = vmatprep.subr.mxu0 %v74_v25  ;;  %v266_v56 = vrot.slane %v253_v54, %v265_v52  ;;  %v258_v57 = vrot.slane %v253_v54, %v257_v53  ;;  %v262_v59 = vrot.slane %v253_v54, %v261_v55 }
  0x2d   :  { %326 = vmatpush3.msra.mxu1 %v75_v26  ;;  %117 = vmatpush1.msra.mxu0 %v73_v27 }
  0x2e   :  { %327 = vmatprep.subr.mxu1 %v421_v0  ;;  %118 = vmatprep.subr.mxu0 %v71_v28 }
  0x2f   :  { %328 = vmatpush3.msra.mxu1 %v72_v29  ;;  %119 = vmatpush1.msra.mxu0 %v70_v30 }
  0x30   :  { %329 = vmatprep.subr.mxu1 %v421_v0  ;;  %120 = vmatprep.subr.mxu0 %v68_v31 }
  0x31   :  { %330 = vmatpush3.msra.mxu1 %v69_v32  ;;  %121 = vmatpush1.msra.mxu0 %v67_v33 }
  0x32   :  { %331 = vmatprep.subr.mxu1 %v421_v0  ;;  %122 = vmatprep.subr.mxu0 %v65_v34 }
  0x33   :  { %332 = vmatpush3.msra.mxu1 %v66_v35  ;;  %123 = vmatpush1.msra.mxu0 %v64_v36 }
  0x34   :  { %333 = vmatprep.subr.mxu1 %v421_v0  ;;  %124 = vmatprep.subr.mxu0 %v62_v37 }
  0x35   :  { %334 = vmatpush3.msra.mxu1 %v63_v38  ;;  %125 = vmatpush1.msra.mxu0 %v61_v39 }
  0x36   :  { %335 = vmatprep.subr.mxu1 %v421_v0  ;;  %126 = vmatprep.subr.mxu0 %v59_v40 }
  0x37   :  { %336 = vmatpush3.msra.mxu1 %v60_v41  ;;  %127 = vmatpush1.msra.mxu0 %v58_v42 }
  0x38   :  { %337 = vmatprep.subr.mxu1 %v421_v0  ;;  %128 = vmatprep.subr.mxu0 %v56_v43 }
  0x39   :  { %338 = vmatpush3.msra.mxu1 %v57_v44  ;;  %129 = vmatpush1.msra.mxu0 %v55_v45 }
  0x3a   :  { %339 = vmatprep.subr.mxu1 %v421_v0  ;;  %130 = vmatprep.subr.mxu0 %v53_v46 }
  0x3b   :  { %340 = vmatpush3.msra.mxu1 %v54_v47  ;;  %131 = vmatpush1.msra.mxu0 %v52_v48 }
  0x3c   :  { %342 = vmatmul.mubr.f32.vlgmr.msra.gmra.mxu1 %v51_v49  ;;  %165 = vmatmul.mubr.f32.vlgmr.msra.gmra.mxu0 %v51_v49 }
  0xfc   :  { %v237_v58 = vpop.f32.mrf.mxu1  ;;  %v166_v60 = vpop.f32.mrf.mxu0 }
  0xfd   :  { %v272_v61 = vadd.f32 %v266_v56, %v237_v58  ;;  %v270_v62 = vadd.f32 %v258_v57, %v166_v60 }
  0xfe   :  { %v343_v63 = vpop.f32.mrf.mxu1  ;;  %v168_v0 = vpop.f32.mrf.mxu0 }
  0xff   :  { %275 = vst [vmem:[#allocation8 + $0x10] sm:$0xff] %v272_v61  ;;  %273 = vst [vmem:[#allocation8] sm:$0xff] %v270_v62  ;;  %v271_v1 = vadd.f32 %v262_v59, %v168_v0 }
 0x101   :  { %274 = vst [vmem:[#allocation8 + $0x8] sm:$0xff] %v271_v1 }
 0x102   :  { %402 = shalt.err (!%p399_p0)
}
 0x103   :  { %285 = dma.vmem_to_hbm [thread:$0]  %s283_s25, 384, %s477_s3, [#allocation5]  }
 0x104   :  { %415 = dma.done.wait [#allocation5], 384  }
 0x105   :  { %416 = vsyncadd [#allocation5], 4294966912 }
 0x106   :  { %289 = vsyncpa [#allocation4], 1 }
 0x107   :  { %290 = vsyncpa [#allocation7], 1 }
 0x108   :  { %291 = vsyncpa [#allocation5], 1 }

</bundles_post_ra>
